<compile_context>
chip_gen: v6e
topology: v6e:2x2x1
jax: 0.10.0
libtpu: 0.0.40
codegen_flags: <defaults>
</compile_context>

<pallas_src>
import functools

import jax
import jax.numpy as jnp
from jax import lax
from jax.experimental import pallas as pl
from jax.experimental.pallas import tpu as pltpu

_LANE = 128
_SUBLANE = 8


def _debias_head_kernel(x_ref, wp_ref, bp_ref, wf_ref, bf_ref, out_ref):
    """Fused BertPooler (dense + tanh) + classification FC head.

    x_ref  : (TB, H)      CLS hidden-state tile
    wp_ref : (H, H)       pooler weight, PyTorch (out, in) layout
    bp_ref : (1, H)       pooler bias
    wf_ref : (C_pad, H)   FC weight, PyTorch (out, in) layout, lane-padded
    bf_ref : (1, C_pad)   FC bias, lane-padded
    out_ref: (TB, C_pad)  cls_logits tile (lane dense)
    """
    contract_last = (((1,), (1,)), ((), ()))

    # pooler_output = tanh(x @ Wp^T + bp)
    # Contract last dims of both operands: MXU consumes the (out, in) weight
    # layout as-is -- no in-kernel transpose / VMEM relayout copy.
    pooled = jnp.tanh(
        lax.dot_general(
            x_ref[...], wp_ref[...],
            dimension_numbers=contract_last,
            preferred_element_type=jnp.float32,
        )
        + bp_ref[...].astype(jnp.float32)
    )

    # Dropout is the identity at inference (module eval mode).

    # cls_logits = pooled @ Wf^T + bf.  pooled stays f32 (v5e has no bf16
    # VPU/EUP and the N dim is tiny, so downcasting buys nothing).
    logits = (
        lax.dot_general(
            pooled, wf_ref[...].astype(jnp.float32),
            dimension_numbers=contract_last,
            preferred_element_type=jnp.float32,
        )
        + bf_ref[...].astype(jnp.float32)
    )
    out_ref[...] = logits.astype(out_ref.dtype)


def _round_up(x, m):
    return -(-x // m) * m


@functools.partial(jax.jit, static_argnames=("block_b",))
def debias_forward(cls_hidden, w_pool, b_pool, w_fc, b_fc, *, block_b=128):
    """Eval-mode DebiasModel forward: returns cls_logits of shape (B, out_dim)."""
    B, H = cls_hidden.shape
    C = w_fc.shape[0]

    # Lane-dense logits: pad the class dim up to 128 so output stores are
    # unmasked vst (padding sliced off below).
    C_pad = _round_up(C, _LANE)
    # Batch tile: multiple of 8 sublanes; one grid step for small batches,
    # pipelined + megacore-parallel tiles for large batches.
    TB = min(_round_up(B, _SUBLANE), block_b)
    B_pad = _round_up(B, TB)

    x = cls_hidden
    if B_pad != B:
        x = jnp.pad(x, ((0, B_pad - B), (0, 0)))
    wf = jnp.pad(w_fc, ((0, C_pad - C), (0, 0)))
    bf = jnp.pad(b_fc, (0, C_pad - C)).reshape(1, C_pad)
    bp = b_pool.reshape(1, H)

    const = lambda i: (0, 0)

    out = pl.pallas_call(
        _debias_head_kernel,
        out_shape=jax.ShapeDtypeStruct((B_pad, C_pad), jnp.float32),
        grid=(B_pad // TB,),
        in_specs=[
            pl.BlockSpec((TB, H), lambda i: (i, 0)),   # CLS tiles, double-buffered
            pl.BlockSpec((H, H), const),               # Wp resident in VMEM
            pl.BlockSpec((1, H), const),               # bp resident
            pl.BlockSpec((C_pad, H), const),           # Wf resident
            pl.BlockSpec((1, C_pad), const),           # bf resident
        ],
        out_specs=pl.BlockSpec((TB, C_pad), lambda i: (i, 0)),
        compiler_params=pltpu.CompilerParams(
            dimension_semantics=("parallel",),         # batch tiles shard across TCs
        ),
    )(x, w_pool, bp, wf, bf)

    return out[:B, :C]


def reference_forward(cls_hidden, w_pool, b_pool, w_fc, b_fc):
    pooled = jnp.tanh(cls_hidden @ w_pool.T + b_pool)
    return pooled @ w_fc.T + b_fc


if __name__ == "__main__":
    # Small-but-aligned shapes consistent with the head: batch=8, hidden=128
    # (lane-aligned "bert-tiny" width), out_dim=4.  Production would use
    # H=768 (BERT-base), large batch, and bf16 activations/weights.
    B, H, C = 8, 128, 4

    key = jax.random.PRNGKey(0)
    k_x, k_wp, k_bp, k_wf, k_bf = jax.random.split(key, 5)

    # TODO(synk): tokenizer + pretrained 12-layer BERT encoder are not
    # translated; the kernel starts from the encoder's CLS hidden vector.
    cls_hidden = jax.random.normal(k_x, (B, H), dtype=jnp.float32)

    # BertPooler: Linear(H, H) followed by tanh.
    w_pool = jax.random.normal(k_wp, (H, H), dtype=jnp.float32) * 0.02
    b_pool = jax.random.normal(k_bp, (H,), dtype=jnp.float32) * 0.02

    # FC head, init='gauss0.02' as in FC.__init__: N(0, 0.02) weight and bias.
    w_fc = jax.random.normal(k_wf, (C, H), dtype=jnp.float32) * 0.02
    b_fc = jax.random.normal(k_bf, (C,), dtype=jnp.float32) * 0.02

    logits = debias_forward(cls_hidden, w_pool, b_pool, w_fc, b_fc)
    jax.block_until_ready(logits)

    ref = reference_forward(cls_hidden, w_pool, b_pool, w_fc, b_fc)
    assert logits.shape == (B, C)
    assert jnp.allclose(logits, ref, atol=1e-5, rtol=1e-5)

    print("KERNEL_OK")
</pallas_src>

<mosaic_0001>
module attributes {stable_mosaic.version = 11 : i64} {
  func.func @_debias_head_kernel(%arg0: i32, %arg1: memref<8x128xf32, #tpu.memory_space<vmem>>, %arg2: memref<128x128xf32, #tpu.memory_space<vmem>>, %arg3: memref<1x128xf32, #tpu.memory_space<vmem>>, %arg4: memref<128x128xf32, #tpu.memory_space<vmem>>, %arg5: memref<1x128xf32, #tpu.memory_space<vmem>>, %arg6: memref<8x128xf32, #tpu.memory_space<vmem>>) attributes {dimension_semantics = [#tpu.dimension_semantics<parallel>], iteration_bounds = array<i64: 1>, scalar_prefetch = 0 : i64, scratch_operands = 0 : i64, tpu.core_type = #tpu.core_type<tc>, window_params = [{transform_indices = @transform_0, window_bounds = array<i64: 8, 128>}, {pipeline_mode = #tpu.pipeline_mode<synchronous>, transform_indices = @transform_1, window_bounds = array<i64: 128, 128>}, {pipeline_mode = #tpu.pipeline_mode<synchronous>, transform_indices = @transform_2, window_bounds = array<i64: 1, 128>}, {pipeline_mode = #tpu.pipeline_mode<synchronous>, transform_indices = @transform_3, window_bounds = array<i64: 128, 128>}, {pipeline_mode = #tpu.pipeline_mode<synchronous>, transform_indices = @transform_4, window_bounds = array<i64: 1, 128>}, {transform_indices = @transform_5, window_bounds = array<i64: 8, 128>}]} {
    %c0 = arith.constant 0 : index
    %c0_0 = arith.constant 0 : index
    %0 = vector.load %arg1[%c0, %c0_0] : memref<8x128xf32, #tpu.memory_space<vmem>>, vector<8x128xf32>
    %c0_1 = arith.constant 0 : index
    %c0_2 = arith.constant 0 : index
    %1 = vector.load %arg2[%c0_1, %c0_2] : memref<128x128xf32, #tpu.memory_space<vmem>>, vector<128x128xf32>
    %cst = arith.constant dense<0.000000e+00> : vector<8x128xf32>
    %2 = tpu.matmul %0, %1, %cst {dimension_numbers = #tpu.dot_dimension_numbers<[1], [1], [0], [0], [0, 0, 1, 0], [], []>} : vector<8x128xf32>, vector<128x128xf32>, vector<8x128xf32> -> vector<8x128xf32>
    %c0_3 = arith.constant 0 : index
    %c0_4 = arith.constant 0 : index
    %3 = vector.load %arg3[%c0_3, %c0_4] : memref<1x128xf32, #tpu.memory_space<vmem>>, vector<1x128xf32>
    %4 = vector.broadcast %3 : vector<1x128xf32> to vector<8x128xf32>
    %5 = arith.addf %2, %4 : vector<8x128xf32>
    %6 = math.tanh %5 : vector<8x128xf32>
    %c0_5 = arith.constant 0 : index
    %c0_6 = arith.constant 0 : index
    %7 = vector.load %arg4[%c0_5, %c0_6] : memref<128x128xf32, #tpu.memory_space<vmem>>, vector<128x128xf32>
    %cst_7 = arith.constant dense<0.000000e+00> : vector<8x128xf32>
    %8 = tpu.matmul %6, %7, %cst_7 {dimension_numbers = #tpu.dot_dimension_numbers<[1], [1], [0], [0], [0, 0, 1, 0], [], []>} : vector<8x128xf32>, vector<128x128xf32>, vector<8x128xf32> -> vector<8x128xf32>
    %c0_8 = arith.constant 0 : index
    %c0_9 = arith.constant 0 : index
    %9 = vector.load %arg5[%c0_8, %c0_9] : memref<1x128xf32, #tpu.memory_space<vmem>>, vector<1x128xf32>
    %10 = vector.broadcast %9 : vector<1x128xf32> to vector<8x128xf32>
    %11 = arith.addf %8, %10 : vector<8x128xf32>
    %c0_10 = arith.constant 0 : index
    %c0_11 = arith.constant 0 : index
    %12 = vector.load %arg6[%c0_10, %c0_11] : memref<8x128xf32, #tpu.memory_space<vmem>>, vector<8x128xf32>
    tpu.vector_store %arg6[%c0_10, %c0_11], %11 {strides = array<i32>} : memref<8x128xf32, #tpu.memory_space<vmem>>, vector<8x128xf32>,
    return
  }
  func.func @transform_0(%arg0: i32) -> (i32, i32) {
    %c0_i32 = arith.constant 0 : i32
    %c0_i32_0 = arith.constant 0 : i32
    return %arg0, %c0_i32 : i32, i32
  }
  func.func @transform_1(%arg0: i32) -> (i32, i32) {
    %c0_i32 = arith.constant 0 : i32
    %c0_i32_0 = arith.constant 0 : i32
    %c0_i32_1 = arith.constant 0 : i32
    return %c0_i32, %c0_i32_0 : i32, i32
  }
  func.func @transform_2(%arg0: i32) -> (i32, i32) {
    %c0_i32 = arith.constant 0 : i32
    %c0_i32_0 = arith.constant 0 : i32
    %c0_i32_1 = arith.constant 0 : i32
    return %c0_i32, %c0_i32_0 : i32, i32
  }
  func.func @transform_3(%arg0: i32) -> (i32, i32) {
    %c0_i32 = arith.constant 0 : i32
    %c0_i32_0 = arith.constant 0 : i32
    %c0_i32_1 = arith.constant 0 : i32
    return %c0_i32, %c0_i32_0 : i32, i32
  }
  func.func @transform_4(%arg0: i32) -> (i32, i32) {
    %c0_i32 = arith.constant 0 : i32
    %c0_i32_0 = arith.constant 0 : i32
    %c0_i32_1 = arith.constant 0 : i32
    return %c0_i32, %c0_i32_0 : i32, i32
  }
  func.func @transform_5(%arg0: i32) -> (i32, i32) {
    %c0_i32 = arith.constant 0 : i32
    %c0_i32_0 = arith.constant 0 : i32
    return %arg0, %c0_i32 : i32, i32
  }
}

</mosaic_0001>

<bundles_post_ra>
// kernel: debias_forward.1
= control target key start
LH: loop header
LB: loop body
LE: loop exit
PB: predicated region body
PF: predicated region fallthrough
CT: control target
= control target key end

     0   :  { %10 = vsyncpa [#allocation3], 0  ;;  %s359_s18 = smov [#allocation2]   ;;  %s534_s0 = inlined_call_operand.vmem [shape: f32[8,128], index: 0, kind: input, shape index: {}]   ;;  %s535_s1 = inlined_call_operand.vmem [shape: f32[128,128], index: 1, kind: input, shape index: {}]   ;;  %s536_s2 = inlined_call_operand.hbm [shape: f32[1,128], index: 2, kind: input, shape index: {}]   ;;  %s537_s3 = inlined_call_operand.vmem [shape: f32[128,128], index: 3, kind: input, shape index: {}]   ;;  %s538_s4 = inlined_call_operand.vmem [shape: f32[1,128], index: 4, kind: input, shape index: {}]   ;;  %s539_s5 = inlined_call_operand.vmem [shape: f32[8,128], index: 5, kind: output, shape index: {}]  }
   0x1   :  { %s21_s19 = sshll.u32 %s359_s18, 4  ;;  %s22_s19 = int_to_ptr.vmem [resolvable:$true] %s21_s19 }
   0x2   :  { %s345_s20 = scalar_lea.vmem %s22_s19, 16  ;;  %s349_s21 = scalar_lea.vmem %s22_s19, 32 }
   0x3   :  { %p346_p0 = scmp.ne.s32.totalorder %s22_s19, %s345_s20  ;;  %p350_p1 = scmp.lt.s32.totalorder %s22_s19, %s22_s19 }
   0x4   :  { %p351_p2 = scmp.lt.s32.totalorder %s349_s21, %s345_s20 }
   0x6   :  { %p352_p3 = por %p351_p2, %p350_p1 }
   0x8   :  { %p353_p4 = pnand %p352_p3, %p346_p0 }
   0xa   :  { %356 = shalt.err (!%p353_p4)
}
   0xb   :  { %24 = dma.hbm_to_vmem [thread:$0]  %s536_s2, 16, %s22_s19, [#allocation3]  }
   0xc   :  { %357 = dma.done.wait [#allocation3], 16  }
   0xd   :  { %358 = vsyncadd [#allocation3], 4294967280  ;;  %v360_v0 = vmov 0.0   ;;  %vm361_vm0 = vmmov 0   ;;  %v48_v1 = vld [vmem:[%s535_s1 + $0x78] sm:$0xff]  ;;  %v47_v2 = vld [vmem:[%s535_s1 + $0x70] sm:$0xff] }
   0xe   :  { %262 = vmatprep.subr.mxu0 %v360_v0  ;;  %294 = vmatprep.mubr.msk.f32.mxu0 %vm361_vm0, %v360_v0  ;;  %v142_v3 = vld [vmem:[%s537_s3 + $0x78] sm:$0xff]  ;;  %v46_v4 = vld [vmem:[%s535_s1 + $0x68] sm:$0xff]  ;;  %v141_v5 = vld [vmem:[%s537_s3 + $0x70] sm:$0xff] }
   0xf   :  { %297 = vmatprep.subr.mxu1 %v360_v0  ;;  %329 = vmatprep.mubr.msk.f32.mxu1 %vm361_vm0, %v360_v0  ;;  %v45_v6 = vld [vmem:[%s535_s1 + $0x60] sm:$0xff]  ;;  %v140_v7 = vld [vmem:[%s537_s3 + $0x68] sm:$0xff]  ;;  %v44_v8 = vld [vmem:[%s535_s1 + $0x58] sm:$0xff] }
  0x10   :  { %263 = vmatpush3.xpose.msra.mxu0 %v48_v1  ;;  %298 = vmatpush3.xpose.msra.mxu1 %v142_v3  ;;  %v139_v9 = vld [vmem:[%s537_s3 + $0x60] sm:$0xff]  ;;  %v43_v10 = vld [vmem:[%s535_s1 + $0x50] sm:$0xff]  ;;  %v138_v11 = vld [vmem:[%s537_s3 + $0x58] sm:$0xff] }
  0x11   :  { %264 = vmatprep.subr.mxu0 %v360_v0  ;;  %299 = vmatprep.subr.mxu1 %v360_v0  ;;  %v42_v12 = vld [vmem:[%s535_s1 + $0x48] sm:$0xff]  ;;  %v137_v13 = vld [vmem:[%s537_s3 + $0x50] sm:$0xff]  ;;  %v41_v14 = vld [vmem:[%s535_s1 + $0x40] sm:$0xff] }
  0x12   :  { %v136_v15 = vld [vmem:[%s537_s3 + $0x48] sm:$0xff]  ;;  %v40_v16 = vld [vmem:[%s535_s1 + $0x38] sm:$0xff]  ;;  %v135_v17 = vld [vmem:[%s537_s3 + $0x40] sm:$0xff] }
  0x13   :  { %v39_v18 = vld [vmem:[%s535_s1 + $0x30] sm:$0xff]  ;;  %v134_v19 = vld [vmem:[%s537_s3 + $0x38] sm:$0xff]  ;;  %v38_v20 = vld [vmem:[%s535_s1 + $0x28] sm:$0xff] }
  0x14   :  { %265 = vmatpush3.xpose.msra.mxu0 %v47_v2  ;;  %300 = vmatpush3.xpose.msra.mxu1 %v141_v5  ;;  %v133_v21 = vld [vmem:[%s537_s3 + $0x30] sm:$0xff]  ;;  %v37_v22 = vld [vmem:[%s535_s1 + $0x20] sm:$0xff]  ;;  %v132_v23 = vld [vmem:[%s537_s3 + $0x28] sm:$0xff] }
  0x15   :  { %266 = vmatprep.subr.mxu0 %v360_v0  ;;  %301 = vmatprep.subr.mxu1 %v360_v0  ;;  %v36_v24 = vld [vmem:[%s535_s1 + $0x18] sm:$0xff]  ;;  %v131_v25 = vld [vmem:[%s537_s3 + $0x20] sm:$0xff]  ;;  %v35_v26 = vld [vmem:[%s535_s1 + $0x10] sm:$0xff] }
  0x16   :  { %v34_v27 = vld [vmem:[%s535_s1 + $0x8] sm:$0xff]  ;;  %v33_v28 = vld [vmem:[%s535_s1] sm:$0xff]  ;;  %v130_v30 = vld [vmem:[%s537_s3 + $0x18] sm:$0xff] }
  0x17   :  { %v32_v29 = vld [vmem:[%s534_s0] sm:$0xff]  ;;  %v129_v31 = vld [vmem:[%s537_s3 + $0x10] sm:$0xff]  ;;  %v128_v32 = vld [vmem:[%s537_s3 + $0x8] sm:$0xff] }
  0x18   :  { %267 = vmatpush3.xpose.msra.mxu0 %v46_v4  ;;  %302 = vmatpush3.xpose.msra.mxu1 %v140_v7  ;;  %v127_v33 = vld [vmem:[%s537_s3] sm:$0xff] }
  0x19   :  { %268 = vmatprep.subr.mxu0 %v360_v0  ;;  %303 = vmatprep.subr.mxu1 %v360_v0  ;;  %v226_v34 = vld [vmem:[#allocation2] ss:$0 sm:$0xff] }
  0x1a   :  { %v227_v39 = vld [vmem:[%s538_s4] ss:$0 sm:$0xff] }
  0x1c   :  { %269 = vmatpush3.xpose.msra.mxu0 %v45_v6  ;;  %304 = vmatpush3.xpose.msra.mxu1 %v139_v9 }
  0x1d   :  { %270 = vmatprep.subr.mxu0 %v360_v0  ;;  %305 = vmatprep.subr.mxu1 %v360_v0 }
  0x20   :  { %271 = vmatpush3.xpose.msra.mxu0 %v44_v8  ;;  %306 = vmatpush3.xpose.msra.mxu1 %v138_v11 }
  0x21   :  { %272 = vmatprep.subr.mxu0 %v360_v0  ;;  %307 = vmatprep.subr.mxu1 %v360_v0 }
  0x24   :  { %273 = vmatpush3.xpose.msra.mxu0 %v43_v10  ;;  %308 = vmatpush3.xpose.msra.mxu1 %v137_v13 }
  0x25   :  { %274 = vmatprep.subr.mxu0 %v360_v0  ;;  %309 = vmatprep.subr.mxu1 %v360_v0 }
  0x28   :  { %275 = vmatpush3.xpose.msra.mxu0 %v42_v12  ;;  %310 = vmatpush3.xpose.msra.mxu1 %v136_v15 }
  0x29   :  { %276 = vmatprep.subr.mxu0 %v360_v0  ;;  %311 = vmatprep.subr.mxu1 %v360_v0 }
  0x2c   :  { %277 = vmatpush3.xpose.msra.mxu0 %v41_v14  ;;  %312 = vmatpush3.xpose.msra.mxu1 %v135_v17 }
  0x2d   :  { %278 = vmatprep.subr.mxu0 %v360_v0  ;;  %313 = vmatprep.subr.mxu1 %v360_v0 }
  0x30   :  { %279 = vmatpush3.xpose.msra.mxu0 %v40_v16  ;;  %314 = vmatpush3.xpose.msra.mxu1 %v134_v19 }
  0x31   :  { %280 = vmatprep.subr.mxu0 %v360_v0  ;;  %315 = vmatprep.subr.mxu1 %v360_v0 }
  0x34   :  { %281 = vmatpush3.xpose.msra.mxu0 %v39_v18  ;;  %316 = vmatpush3.xpose.msra.mxu1 %v133_v21 }
  0x35   :  { %282 = vmatprep.subr.mxu0 %v360_v0  ;;  %317 = vmatprep.subr.mxu1 %v360_v0 }
  0x38   :  { %283 = vmatpush3.xpose.msra.mxu0 %v38_v20  ;;  %318 = vmatpush3.xpose.msra.mxu1 %v132_v23 }
  0x39   :  { %284 = vmatprep.subr.mxu0 %v360_v0  ;;  %319 = vmatprep.subr.mxu1 %v360_v0 }
  0x3c   :  { %285 = vmatpush3.xpose.msra.mxu0 %v37_v22  ;;  %320 = vmatpush3.xpose.msra.mxu1 %v131_v25 }
  0x3d   :  { %286 = vmatprep.subr.mxu0 %v360_v0  ;;  %321 = vmatprep.subr.mxu1 %v360_v0 }
  0x40   :  { %287 = vmatpush3.xpose.msra.mxu0 %v36_v24  ;;  %322 = vmatpush3.xpose.msra.mxu1 %v130_v30 }
  0x41   :  { %288 = vmatprep.subr.mxu0 %v360_v0  ;;  %323 = vmatprep.subr.mxu1 %v360_v0 }
  0x44   :  { %289 = vmatpush3.xpose.msra.mxu0 %v35_v26  ;;  %324 = vmatpush3.xpose.msra.mxu1 %v129_v31 }
  0x45   :  { %290 = vmatprep.subr.mxu0 %v360_v0  ;;  %325 = vmatprep.subr.mxu1 %v360_v0 }
  0x48   :  { %291 = vmatpush3.xpose.msra.mxu0 %v34_v27  ;;  %326 = vmatpush3.xpose.msra.mxu1 %v128_v32 }
  0x49   :  { %292 = vmatprep.subr.mxu0 %v360_v0  ;;  %327 = vmatprep.subr.mxu1 %v360_v0 }
  0x4c   :  { %293 = vmatpush3.xpose.msra.mxu0 %v33_v28  ;;  %328 = vmatpush3.xpose.msra.mxu1 %v127_v33 }
  0x4f   :  { %295 = vmatmul.mubr.f32.vlgmr.msra.gmra.mxu0 %v32_v29 }
 0x10f   :  { %v122_v35 = vpop.f32.mrf.mxu0 }
 0x110   :  { %v123_v36 = vadd.f32 %v226_v34, %v122_v35 }
 0x111   :  { %v296_v37 = vpop.f32.mrf.mxu0 }
 0x112   :  { %335 = vtanh.f32 %v123_v36 }
 0x11f   :  { %v336_v38 = vpop.eup %335 }
 0x120   :  { %330 = vmatmul.mubr.f32.vlgmr.msra.gmra.mxu1 %v336_v38 }
 0x1e0   :  { %v216_v40 = vpop.f32.mrf.mxu1 }
 0x1e1   :  { %v217_v41 = vadd.f32 %v227_v39, %v216_v40 }
 0x1e2   :  { %v331_v42 = vpop.f32.mrf.mxu1 }
 0x1e3   :  { %220 = vst [vmem:[%s539_s5] sm:$0xff] %v217_v41 }
 0x1e4   :  { %225 = vsyncpa [#allocation3], 1 }

</bundles_post_ra>
